<compile_context>
chip_gen: v7x
topology: tpu7x:2x2x1
jax: 0.10.0
libtpu: 0.0.40
codegen_flags: <defaults>
</compile_context>

<pallas_src>
import jax
import jax.numpy as jnp
from jax.experimental import pallas as pl
from jax.experimental.pallas import tpu as pltpu


def _round_up(a: int, b: int) -> int:
    return ((a + b - 1) // b) * b


def _vmem_capacity_bytes() -> int:
    try:
        info = pltpu.get_tpu_info()
        cap = getattr(info, "vmem_capacity_bytes", None)
        if cap:
            return int(cap)
    except Exception:
        pass
    return 64 * 1024 * 1024  # conservative: v7x per-TensorCore VMEM


def _patch_merging_kernel(x_ref, w_ref, b_ref, o_ref):
    # x_ref : (TM, Kf)  flattened-patch tile (compute dtype)
    # w_ref : (Kf, Co)  conv weight^T with BatchNorm scale folded in (VMEM-resident)
    # b_ref : (1,  Co)  folded BN bias = beta - mean * scale  (f32)
    # o_ref : (TM, Co)  output tile (out dtype)
    y = jnp.dot(x_ref[...], w_ref[...], preferred_element_type=jnp.float32)
    o_ref[...] = (y + b_ref[...]).astype(o_ref.dtype)


def patch_merging_forward(x, conv_w, bn_gamma, bn_beta, bn_mean, bn_var, *,
                          patch_size, patch_stride, eps=1e-5,
                          compute_dtype=jnp.bfloat16, out_dtype=None):
    """x: (N, C, H, W). conv_w: (2C, C, k, k). Returns (N, 2C, H//k, W//k) in out_dtype."""
    assert patch_size == patch_stride, "PatchMerging uses kernel_size == stride"
    N, C, H, W = x.shape
    k = patch_size
    Co = conv_w.shape[0]
    Ho, Wo = H // k, W // k
    Kf = C * k * k
    M = N * Ho * Wo
    out_dtype = x.dtype if out_dtype is None else out_dtype

    # --- glue: one XLA transpose pass forming the (M, Kf) patch matrix in
    #     (c, kh, kw) order, matching PyTorch OIHW conv-weight flattening. ---
    # TODO(synk): fuse this gather into the kernel via NCHW slab BlockSpecs.
    xc = x.astype(compute_dtype)                       # cast fuses with the transpose
    xp = xc.reshape(N, C, Ho, k, Wo, k)
    xp = jnp.transpose(xp, (0, 2, 4, 1, 3, 5)).reshape(M, Kf)

    # --- fold BatchNorm (eval) into the weight + a per-channel bias ---
    scale = bn_gamma / jnp.sqrt(bn_var + eps)          # (Co,)
    bias = (bn_beta - bn_mean * scale).astype(jnp.float32).reshape(1, Co)
    w_folded = (conv_w.reshape(Co, Kf).T * scale[None, :]).astype(compute_dtype)

    # --- tile selection & VMEM budget (accurate, per-generation) ---
    cap = _vmem_capacity_bytes()
    x_item = jnp.dtype(compute_dtype).itemsize
    o_item = jnp.dtype(out_dtype).itemsize

    def budget(tm):
        return (2 * tm * Kf * x_item            # activation tile, double-buffered
                + 2 * tm * Co * o_item          # output tile, double-buffered
                + 2 * Kf * Co * x_item          # resident folded weight (2 pipeline bufs)
                + 2 * 8 * max(Co, 128) * 4)     # bias (vreg-padded), 2 bufs

    # Bigger tiles when VMEM is plentiful (v5e/v6e 128 MiB); conservative on v7x (64 MiB).
    tm_target = 1024 if cap > (96 << 20) else 512
    if M <= 2 * tm_target:
        # Guarantee >= 2 grid steps so the "parallel" axis can shard across
        # v7x's two TensorCores even for small M.
        TM = max(8, _round_up(pl.cdiv(M, 2), 8))
    else:
        TM = tm_target
    while TM > 8 and budget(TM) > 0.6 * cap:
        TM = max(8, _round_up(TM // 2, 8))
    TM = min(TM, _round_up(M, 8))
    num_steps = pl.cdiv(M, TM)
    vmem_limit = int(min(max(2 * budget(TM), 32 << 20), int(0.9 * cap)))

    out = pl.pallas_call(
        _patch_merging_kernel,
        out_shape=jax.ShapeDtypeStruct((M, Co), out_dtype),
        grid=(num_steps,),
        in_specs=[
            pl.BlockSpec((TM, Kf), lambda i: (i, 0)),   # activation tiles (ragged last ok)
            pl.BlockSpec((Kf, Co), lambda i: (0, 0)),   # folded weight: VMEM-resident
            pl.BlockSpec((1, Co), lambda i: (0, 0)),    # folded bias:   VMEM-resident
        ],
        out_specs=pl.BlockSpec((TM, Co), lambda i: (i, 0)),
        compiler_params=pltpu.CompilerParams(
            dimension_semantics=("parallel",),
            vmem_limit_bytes=vmem_limit,
        ),
    )(xp, w_folded, bias)

    # --- glue: back to NCHW to match the PyTorch module's output layout ---
    # (If downstream accepts NHWC, skip this transpose to save a full HBM pass.)
    out = out.reshape(N, Ho, Wo, Co)
    out = jnp.transpose(out, (0, 3, 1, 2))
    return out


def _reference(x, conv_w, bn_gamma, bn_beta, bn_mean, bn_var, *, stride, eps=1e-5):
    y = jax.lax.conv_general_dilated(
        x, conv_w, window_strides=(stride, stride), padding="VALID",
        dimension_numbers=("NCHW", "OIHW", "NCHW"))
    scale = bn_gamma / jnp.sqrt(bn_var + eps)
    bias = bn_beta - bn_mean * scale
    return y * scale[None, :, None, None] + bias[None, :, None, None]


if __name__ == "__main__":
    # Module config: PatchMerging(patch_size2=2, patch_stride2=2, dim=4, norm_layer=BatchNorm2d)
    patch_size2, patch_stride2, dim = 2, 2, 4
    out_dim = 2 * dim

    key = jax.random.PRNGKey(0)
    k_x, k_w, k_g, k_b, k_m, k_v = jax.random.split(key, 6)

    x = jax.random.normal(k_x, (2, dim, 16, 16), dtype=jnp.float32)
    conv_w = jax.random.normal(k_w, (out_dim, dim, patch_size2, patch_size2),
                               dtype=jnp.float32) * 0.1
    bn_gamma = 1.0 + 0.1 * jax.random.normal(k_g, (out_dim,), dtype=jnp.float32)
    bn_beta = 0.1 * jax.random.normal(k_b, (out_dim,), dtype=jnp.float32)
    bn_mean = 0.1 * jax.random.normal(k_m, (out_dim,), dtype=jnp.float32)
    bn_var = jnp.abs(jax.random.normal(k_v, (out_dim,), dtype=jnp.float32)) + 0.5

    y_ref = _reference(x, conv_w, bn_gamma, bn_beta, bn_mean, bn_var,
                       stride=patch_stride2)

    # f32 compute path: bit-tight against the reference.
    y32 = patch_merging_forward(x, conv_w, bn_gamma, bn_beta, bn_mean, bn_var,
                                patch_size=patch_size2, patch_stride=patch_stride2,
                                compute_dtype=jnp.float32)
    y32 = jax.block_until_ready(y32)
    assert y32.shape == (2, out_dim, 8, 8)
    assert jnp.allclose(y32, y_ref, atol=1e-4, rtol=1e-4), "f32 path mismatch vs reference"

    # Default bf16 I/O path (halves HBM traffic on v6e/v7x); f32 accumulation,
    # so only input-rounding error remains -> relaxed tolerance.
    ybf = patch_merging_forward(x, conv_w, bn_gamma, bn_beta, bn_mean, bn_var,
                                patch_size=patch_size2, patch_stride=patch_stride2)
    ybf = jax.block_until_ready(ybf)
    assert ybf.shape == (2, out_dim, 8, 8)
    assert jnp.allclose(ybf, y_ref, atol=5e-2, rtol=5e-2), "bf16 path mismatch vs reference"

    print("KERNEL_OK")
</pallas_src>

<mosaic_0001>
module attributes {stable_mosaic.version = 11 : i64} {
  func.func @_patch_merging_kernel(%arg0: i32, %arg1: memref<64x16xf32, #tpu.memory_space<vmem>>, %arg2: memref<16x8xf32, #tpu.memory_space<vmem>>, %arg3: memref<1x8xf32, #tpu.memory_space<vmem>>, %arg4: memref<64x8xf32, #tpu.memory_space<vmem>>) attributes {dimension_semantics = [#tpu.dimension_semantics<parallel>], iteration_bounds = array<i64: 2>, scalar_prefetch = 0 : i64, scratch_operands = 0 : i64, tpu.core_type = #tpu.core_type<tc>, window_params = [{transform_indices = @transform_0, window_bounds = array<i64: 64, 16>}, {pipeline_mode = #tpu.pipeline_mode<synchronous>, transform_indices = @transform_1, window_bounds = array<i64: 16, 8>}, {pipeline_mode = #tpu.pipeline_mode<synchronous>, transform_indices = @transform_2, window_bounds = array<i64: 1, 8>}, {transform_indices = @transform_3, window_bounds = array<i64: 64, 8>}]} {
    %c0 = arith.constant 0 : index
    %c0_0 = arith.constant 0 : index
    %0 = vector.load %arg1[%c0, %c0_0] : memref<64x16xf32, #tpu.memory_space<vmem>>, vector<64x16xf32>
    %c0_1 = arith.constant 0 : index
    %c0_2 = arith.constant 0 : index
    %1 = vector.load %arg2[%c0_1, %c0_2] : memref<16x8xf32, #tpu.memory_space<vmem>>, vector<16x8xf32>
    %cst = arith.constant dense<0.000000e+00> : vector<64x8xf32>
    %2 = tpu.matmul %0, %1, %cst {dimension_numbers = #tpu.dot_dimension_numbers<[1], [0], [0], [1], [0, 0, 1, 1], [], []>} : vector<64x16xf32>, vector<16x8xf32>, vector<64x8xf32> -> vector<64x8xf32>
    %c0_3 = arith.constant 0 : index
    %c0_4 = arith.constant 0 : index
    %3 = vector.load %arg3[%c0_3, %c0_4] : memref<1x8xf32, #tpu.memory_space<vmem>>, vector<1x8xf32>
    %4 = vector.broadcast %3 : vector<1x8xf32> to vector<64x8xf32>
    %5 = arith.addf %2, %4 : vector<64x8xf32>
    %c0_5 = arith.constant 0 : index
    %c0_6 = arith.constant 0 : index
    %6 = vector.load %arg4[%c0_5, %c0_6] : memref<64x8xf32, #tpu.memory_space<vmem>>, vector<64x8xf32>
    tpu.vector_store %arg4[%c0_5, %c0_6], %5 {strides = array<i32>} : memref<64x8xf32, #tpu.memory_space<vmem>>, vector<64x8xf32>,
    return
  }
  func.func @transform_0(%arg0: i32) -> (i32, i32) {
    %c0_i32 = arith.constant 0 : i32
    %c0_i32_0 = arith.constant 0 : i32
    return %arg0, %c0_i32 : i32, i32
  }
  func.func @transform_1(%arg0: i32) -> (i32, i32) {
    %c0_i32 = arith.constant 0 : i32
    %c0_i32_0 = arith.constant 0 : i32
    %c0_i32_1 = arith.constant 0 : i32
    return %c0_i32, %c0_i32_0 : i32, i32
  }
  func.func @transform_2(%arg0: i32) -> (i32, i32) {
    %c0_i32 = arith.constant 0 : i32
    %c0_i32_0 = arith.constant 0 : i32
    %c0_i32_1 = arith.constant 0 : i32
    return %c0_i32, %c0_i32_0 : i32, i32
  }
  func.func @transform_3(%arg0: i32) -> (i32, i32) {
    %c0_i32 = arith.constant 0 : i32
    %c0_i32_0 = arith.constant 0 : i32
    return %arg0, %c0_i32 : i32, i32
  }
}

</mosaic_0001>

<bundles_post_ra>
// kernel: tpu_custom_call.1
= control target key start
LH: loop header
LB: loop body
LE: loop exit
PB: predicated region body
PF: predicated region fallthrough
CT: control target
= control target key end

     0   :  { %s474_s12 = smov 0   ;;  %s516_s0 = inlined_call_operand.vmem [shape: f32[128,16], index: 0, kind: input, shape index: {}]   ;;  %s517_s1 = inlined_call_operand.vmem [shape: f32[16,8], index: 1, kind: input, shape index: {}]   ;;  %s518_s2 = inlined_call_operand.vmem [shape: f32[1,8], index: 2, kind: input, shape index: {}]   ;;  %s519_s3 = inlined_call_operand.vmem [shape: f32[128,8], index: 3, kind: output, shape index: {}]  }
   0x1 LB: > { %s386_s13 = sadd.s32 4294967295, %s452_s12   ;;  %p390_p0 = scmp.ge.s32.totalorder %s452_s12, 1  ;;  %s452_s12 = sphi %s474_s12, %s13_s12  }
   0x2   : > { %p138_p1 = scmp.lt.s32.totalorder %s452_s12, 3 }
   0x4   : > { %p139_p2 = pnand %p390_p0, %p138_p1 }
   0x5   : > { %v182_v0 = vld [vmem:[%s517_s1] sm:$0xff] (!%p139_p2)  ;;  %v183_v1 = vld [vmem:[%s517_s1 + $0x8] sm:$0xff] (!%p139_p2)  ;;  %s391_s18 = sshll.u32 (!%p139_p2), %s386_s13, 3  ;;  %vm191_vm0 = vcmask (!%p139_p2), 130048   ;;  %vm321_vm1 = vcmask (!%p139_p2), 64512  }
   0x6   : > { %142 = sbr.rel (%p139_p2) target bundleno = 239 (0xef), region = 32  ;;  %v432_v2 = vpack.c.bf16 (!%p139_p2), %v183_v1, %v182_v0  ;;  %p163_p3 = scmp.lt.s32.totalorder (!%p139_p2), %s391_s18, 15  ;;  %v395_v11 = vld [vmem:[%s518_s2] ss:$0 sm:$0xff] (!%p139_p2) }
   0x8   : > { %433 = vmatprep.subr.bf16.mxu0 (!%p139_p2), %v432_v2  ;;  %436 = vmatprep.subr.bf16.mxu1 (!%p139_p2), %v432_v2 }
   0x9   : > { %435 = vmatpush3.bf16.msra.mxu0 (!%p139_p2), %v432_v2  ;;  %437 = vmatpush3.bf16.msra.mxu1 (!%p139_p2), %v432_v2 }
   0xd   : > { %s521_s18 = smov (!%p163_p3, %s391_s18), 15 }
   0xe   : > { %s392_s19 = sshll.u32 %s521_s18, 3 }
   0xf   : > { %s166_s22 = scalar_lea.vmem %s516_s0, %s392_s19  ;;  %s172_s27 = scalar_lea.vmem %s519_s3, %s392_s19 }
  0x10   : > { %v174_v3 = vld [vmem:[%s166_s22] sm:$0xff]  ;;  %v175_v5 = vld [vmem:[%s166_s22 + $0x8] sm:$0xff]  ;;  %v176_v7 = vld [vmem:[%s166_s22 + $0x10] sm:$0xff] }
  0x11   : > { %v178_v4 = vld [vmem:[%s166_s22 + $0x20] sm:$0xff]  ;;  %420 = vmatprep.mubr.msk.f32.mxu0 %vm191_vm0, %v174_v3  ;;  %v179_v6 = vld [vmem:[%s166_s22 + $0x28] sm:$0xff]  ;;  %v180_v8 = vld [vmem:[%s166_s22 + $0x30] sm:$0xff] }
  0x12   : > { %426 = vmatprep.mubr.msk.f32.mxu1 %vm191_vm0, %v178_v4  ;;  %421 = vmatmul.mubr.msk.f32.vlgmr.msra.gmra.mrb[0].mxu0 %vm191_vm0, %v175_v5  ;;  %v177_v9 = vld [vmem:[%s166_s22 + $0x18] sm:$0xff] }
  0x13   : > { %427 = vmatmul.mubr.msk.f32.vlgmr.msra.gmra.mrb[0].mxu1 %vm191_vm0, %v179_v6  ;;  %423 = vmatprep.mubr.msk.f32.mxu0 %vm191_vm0, %v176_v7  ;;  %v181_v10 = vld [vmem:[%s166_s22 + $0x38] sm:$0xff] }
  0x14   : > { %429 = vmatprep.mubr.msk.f32.mxu1 %vm191_vm0, %v180_v8 }
  0x16   : > { %424 = vmatmul.mubr.msk.f32.gmra.mrb[2].mxu0 %vm191_vm0, %v177_v9 }
  0x17   : > { %430 = vmatmul.mubr.msk.f32.gmra.mrb[2].mxu1 %vm191_vm0, %v181_v10 }
  0xe5   : > { %v422_v12 = vpop.f32.mrb[0].mxu0 }
  0xe6   : > { %v428_v13 = vpop.f32.mrb[0].mxu1  ;;  %v288_v14 = vadd.f32 %v422_v12, %v395_v11  ;;  %v282_v16 = vpop.f32.mrb[1].mxu0 }
  0xe7   : > { %v308_v15 = vadd.f32 %v428_v13, %v395_v11  ;;  %v302_v17 = vpop.f32.mrb[1].mxu1  ;;  %v283_v18 = vadd.f32 %v395_v11, %v282_v16 }
  0xe8   : > { %v303_v19 = vadd.f32 %v395_v11, %v302_v17  ;;  %323 = vst.msk [vmem:[%s172_s27 + $0x8] sm:$0xff] %vm321_vm1, %v288_v14 }
  0xe9   : > { %327 = vst.msk [vmem:[%s172_s27 + $0x28] sm:$0xff] %vm321_vm1, %v308_v15  ;;  %322 = vst.msk [vmem:[%s172_s27] sm:$0xff] %vm321_vm1, %v283_v18  ;;  %v425_v20 = vpop.f32.mrb[2].mxu0 }
  0xea   : > { %326 = vst.msk [vmem:[%s172_s27 + $0x20] sm:$0xff] %vm321_vm1, %v303_v19  ;;  %v431_v21 = vpop.f32.mrb[2].mxu1  ;;  %v298_v22 = vadd.f32 %v425_v20, %v395_v11  ;;  %v292_v24 = vpop.f32.mrb[3].mxu0 }
  0xeb   : > { %v318_v23 = vadd.f32 %v431_v21, %v395_v11  ;;  %v312_v25 = vpop.f32.mrb[3].mxu1  ;;  %v293_v26 = vadd.f32 %v395_v11, %v292_v24 }
  0xec   : > { %v313_v27 = vadd.f32 %v395_v11, %v312_v25  ;;  %325 = vst.msk [vmem:[%s172_s27 + $0x18] sm:$0xff] %vm321_vm1, %v298_v22 }
  0xed   : > { %329 = vst.msk [vmem:[%s172_s27 + $0x38] sm:$0xff] %vm321_vm1, %v318_v23  ;;  %324 = vst.msk [vmem:[%s172_s27 + $0x10] sm:$0xff] %vm321_vm1, %v293_v26 }
  0xee   : > { %328 = vst.msk [vmem:[%s172_s27 + $0x30] sm:$0xff] %vm321_vm1, %v313_v27 }
  0xef PF: > { %s13_s12 = sadd.s32 1, %s452_s12  }
  0xf0   : > { %p10_p4 = scmp.ge.s32.totalorder %s13_s12, 4  }
  0xf2   :  { %12 = sbr.rel (!%p10_p4) target bundleno = 1 (0x1), region = 62 }

</bundles_post_ra>
